<compile_context>
chip_gen: v6e
topology: v6e:2x2x1
jax: 0.10.0
libtpu: 0.0.40
codegen_flags: <defaults>
</compile_context>

<pallas_src>
import functools
import math

import jax
import jax.numpy as jnp
from jax.experimental import pallas as pl
from jax.experimental.pallas import tpu as pltpu


def label_smooth_kernel(logits_ref, target_ref, out_ref, *, alpha, num_classes, k_const):
    """One batch tile. Fully independent of other grid steps (safe for "parallel")."""
    x = logits_ref[...].astype(jnp.float32)          # (tile_n, C); cast fuses into reductions
    tgt = target_ref[...]                            # (tile_n, 1) int32
    tn, c = x.shape

    # Stable logsumexp per row (EUP exp + XLU lane reduces; `shifted` never kept live).
    m = jnp.max(x, axis=1, keepdims=True)                                  # (tile_n, 1)
    lse = jnp.log(jnp.sum(jnp.exp(x - m), axis=1, keepdims=True)) + m      # (tile_n, 1)

    # sum of logits and logit at the target class (iota-compare select, no gather).
    sum_x = jnp.sum(x, axis=1, keepdims=True)                              # (tile_n, 1)
    class_ids = jax.lax.broadcasted_iota(jnp.int32, (tn, c), 1)
    x_tgt = jnp.sum(jnp.where(class_ids == tgt, x, 0.0), axis=1, keepdims=True)

    # Folded closed-form KL per row:
    #   loss_r = k_const + logsumexp(x_r) - (1-a)*x_r[tgt] - (a/C)*sum_c x_r[c]
    out_ref[...] = (jnp.float32(k_const)
                    + lse
                    - jnp.float32(1.0 - alpha) * x_tgt
                    - jnp.float32(alpha / float(num_classes)) * sum_x)


def _round_up(x, m):
    return ((x + m - 1) // m) * m


def label_smooth_loss(output, target, num_classes, alpha, tile_n=None):
    n, c = output.shape
    dtype = output.dtype
    itemsize = jnp.dtype(dtype).itemsize
    # sublane granularity: 16 rows for 16-bit dtypes, 8 for 32-bit.
    sub = 16 if itemsize == 2 else 8

    if tile_n is None:
        # ~6 MiB per native logits buffer (double-buffered) leaves room for the f32
        # intermediates within the 48 MiB limit below, even on v7x (64 MiB physical VMEM).
        budget = 6 * 1024 * 1024
        tile_n = max(sub, (budget // (c * itemsize)) // sub * sub)
    tile_n = max(sub, _round_up(min(tile_n, _round_up(n, sub)), sub))
    grid_n = pl.cdiv(n, tile_n)
    n_pad = grid_n * tile_n

    # Compile-time constant: sum_c y_c * log(y_c) for the smoothed one-hot row
    # (zero-valued targets contribute zero loss, matching PyTorch KLDivLoss).
    y_t = 1.0 - alpha + alpha / float(num_classes)
    y_o = alpha / float(num_classes)
    k_const = 0.0
    if y_t > 0.0:
        k_const += y_t * math.log(y_t)
    if y_o > 0.0:
        k_const += (num_classes - 1) * y_o * math.log(y_o)

    kernel = functools.partial(
        label_smooth_kernel,
        alpha=float(alpha),
        num_classes=int(num_classes),
        k_const=float(k_const),
    )

    per_row = pl.pallas_call(
        kernel,
        out_shape=jax.ShapeDtypeStruct((n_pad, 1), jnp.float32),
        grid=(grid_n,),
        in_specs=[
            pl.BlockSpec((tile_n, c), lambda i: (i, 0)),   # logits tile (native dtype)
            pl.BlockSpec((tile_n, 1), lambda i: (i, 0)),   # target tile (int32)
        ],
        out_specs=pl.BlockSpec((tile_n, 1), lambda i: (i, 0)),  # per-row losses
        compiler_params=pltpu.CompilerParams(
            dimension_semantics=("parallel",),             # independent tiles -> both TCs
            vmem_limit_bytes=48 * 1024 * 1024,
        ),
    )(output, target.reshape(n, 1).astype(jnp.int32))

    # reduction='batchmean': slice off padded rows (garbage), sum, divide by global N.
    return jnp.sum(per_row[:n, 0]) / jnp.float32(n)


def label_smooth_ref(output, target, num_classes, alpha):
    # pure-JAX reference (mirrors the PyTorch module)
    log_probs = jax.nn.log_softmax(output.astype(jnp.float32), axis=1)
    one_hot = jax.nn.one_hot(target, num_classes, dtype=jnp.float32)
    y = one_hot * (1.0 - alpha) + alpha / float(num_classes)
    kl = jnp.where(y > 0, y * (jnp.log(jnp.where(y > 0, y, 1.0)) - log_probs), 0.0)
    return jnp.sum(kl) / output.shape[0]


if __name__ == "__main__":
    num_classes = 32
    batch = 12          # not a multiple of the tile -> exercises remainder handling
    alpha = 0.1

    key = jax.random.PRNGKey(0)
    k_logits, k_target = jax.random.split(key)
    logits = jax.random.normal(k_logits, (batch, num_classes), dtype=jnp.float32)
    target = jax.random.randint(k_target, (batch,), 0, num_classes, dtype=jnp.int32)

    ref = label_smooth_ref(logits, target, num_classes, alpha)

    # tile_n=8 -> grid=(2,), exercising multi-tile + remainder path.
    loss_small_tile = jax.block_until_ready(
        label_smooth_loss(logits, target, num_classes, alpha, tile_n=8))
    assert jnp.allclose(loss_small_tile, ref, atol=1e-5, rtol=1e-5), (loss_small_tile, ref)

    # default tile sizing -> grid=(1,)
    loss_default = jax.block_until_ready(
        label_smooth_loss(logits, target, num_classes, alpha))
    assert jnp.allclose(loss_default, ref, atol=1e-5, rtol=1e-5), (loss_default, ref)

    print("KERNEL_OK")
</pallas_src>

<mosaic_0001>
module attributes {stable_mosaic.version = 11 : i64} {
  func.func @label_smooth_kernel(%arg0: i32, %arg1: memref<8x32xf32, #tpu.memory_space<vmem>>, %arg2: memref<8x1xi32, #tpu.memory_space<vmem>>, %arg3: memref<8x1xf32, #tpu.memory_space<vmem>>) attributes {dimension_semantics = [#tpu.dimension_semantics<parallel>], iteration_bounds = array<i64: 2>, scalar_prefetch = 0 : i64, scratch_operands = 0 : i64, tpu.core_type = #tpu.core_type<tc>, window_params = [{transform_indices = @transform_0, window_bounds = array<i64: 8, 32>}, {transform_indices = @transform_1, window_bounds = array<i64: 8, 1>}, {transform_indices = @transform_2, window_bounds = array<i64: 8, 1>}]} {
    %c0 = arith.constant 0 : index
    %c0_0 = arith.constant 0 : index
    %0 = vector.load %arg1[%c0, %c0_0] : memref<8x32xf32, #tpu.memory_space<vmem>>, vector<8x32xf32>
    %c0_1 = arith.constant 0 : index
    %c0_2 = arith.constant 0 : index
    %1 = vector.load %arg2[%c0_1, %c0_2] : memref<8x1xi32, #tpu.memory_space<vmem>>, vector<8x1xi32>
    %cst = arith.constant dense<0xFF800000> : vector<8xf32>
    %2 = vector.multi_reduction <maximumf>, %0, %cst [1] : vector<8x32xf32> to vector<8xf32>
    %3 = vector.shape_cast %2 : vector<8xf32> to vector<8x1xf32>
    %4 = vector.broadcast %3 : vector<8x1xf32> to vector<8x32xf32>
    %5 = arith.subf %0, %4 : vector<8x32xf32>
    %6 = math.exp %5 : vector<8x32xf32>
    %cst_3 = arith.constant dense<0.000000e+00> : vector<8xf32>
    %7 = vector.multi_reduction <add>, %6, %cst_3 [1] : vector<8x32xf32> to vector<8xf32>
    %8 = vector.shape_cast %7 : vector<8xf32> to vector<8x1xf32>
    %9 = math.log %8 : vector<8x1xf32>
    %10 = arith.addf %9, %3 : vector<8x1xf32>
    %cst_4 = arith.constant dense<0.000000e+00> : vector<8xf32>
    %11 = vector.multi_reduction <add>, %0, %cst_4 [1] : vector<8x32xf32> to vector<8xf32>
    %12 = vector.shape_cast %11 : vector<8xf32> to vector<8x1xf32>
    %13 = tpu.iota {dimensions = array<i32: 1>} : vector<8x32xi32>
    %14 = vector.broadcast %1 : vector<8x1xi32> to vector<8x32xi32>
    %15 = arith.cmpi eq, %13, %14 : vector<8x32xi32>
    %cst_5 = arith.constant 0.000000e+00 : f32
    %16 = vector.broadcast %cst_5 : f32 to vector<8x32xf32>
    %17 = arith.select %15, %0, %16 : vector<8x32xi1>, vector<8x32xf32>
    %cst_6 = arith.constant dense<0.000000e+00> : vector<8xf32>
    %18 = vector.multi_reduction <add>, %17, %cst_6 [1] : vector<8x32xf32> to vector<8xf32>
    %19 = vector.shape_cast %18 : vector<8xf32> to vector<8x1xf32>
    %cst_7 = arith.constant -0.650829374 : f32
    %20 = vector.broadcast %cst_7 : f32 to vector<8x1xf32>
    %21 = arith.addf %20, %10 : vector<8x1xf32>
    %cst_8 = arith.constant 0.899999976 : f32
    %22 = vector.broadcast %cst_8 : f32 to vector<8x1xf32>
    %23 = arith.mulf %22, %19 : vector<8x1xf32>
    %24 = arith.subf %21, %23 : vector<8x1xf32>
    %cst_9 = arith.constant 3.125000e-03 : f32
    %25 = vector.broadcast %cst_9 : f32 to vector<8x1xf32>
    %26 = arith.mulf %25, %12 : vector<8x1xf32>
    %27 = arith.subf %24, %26 : vector<8x1xf32>
    %c0_10 = arith.constant 0 : index
    %c0_11 = arith.constant 0 : index
    %28 = vector.load %arg3[%c0_10, %c0_11] : memref<8x1xf32, #tpu.memory_space<vmem>>, vector<8x1xf32>
    tpu.vector_store %arg3[%c0_10, %c0_11], %27 {strides = array<i32>} : memref<8x1xf32, #tpu.memory_space<vmem>>, vector<8x1xf32>,
    return
  }
  func.func @transform_0(%arg0: i32) -> (i32, i32) {
    %c0_i32 = arith.constant 0 : i32
    %c0_i32_0 = arith.constant 0 : i32
    return %arg0, %c0_i32 : i32, i32
  }
  func.func @transform_1(%arg0: i32) -> (i32, i32) {
    %c0_i32 = arith.constant 0 : i32
    %c0_i32_0 = arith.constant 0 : i32
    return %arg0, %c0_i32 : i32, i32
  }
  func.func @transform_2(%arg0: i32) -> (i32, i32) {
    %c0_i32 = arith.constant 0 : i32
    %c0_i32_0 = arith.constant 0 : i32
    return %arg0, %c0_i32 : i32, i32
  }
}

</mosaic_0001>

<bundles_post_ra>
// kernel: tpu_custom_call.1
= control target key start
LH: loop header
LB: loop body
LE: loop exit
PB: predicated region body
PF: predicated region fallthrough
CT: control target
= control target key end

     0   :  { %s304_s9 = smov 0   ;;  %s333_s0 = inlined_call_operand.vmem [shape: f32[12,32], index: 0, kind: input, shape index: {}]   ;;  %s334_s1 = inlined_call_operand.vmem [shape: s32[12,1], index: 1, kind: input, shape index: {}]   ;;  %s335_s2 = inlined_call_operand.vmem [shape: f32[16,1], index: 2, kind: output, shape index: {}]  }
   0x1 LB: > { %s256_s10 = sadd.s32 4294967295, %s286_s9   ;;  %p260_p0 = scmp.ge.s32.totalorder %s286_s9, 1  ;;  %s286_s9 = sphi %s304_s9, %s12_s9  }
   0x2   : > { %p120_p1 = scmp.lt.s32.totalorder %s286_s9, 3 }
   0x4   : > { %p121_p2 = pnand %p260_p0, %p120_p1 }
   0x5   : > { %p144_p3 = scmp.lt.s32.totalorder (!%p121_p2), %s256_s10, 1 }
   0x6   : > { %124 = sbr.rel (%p121_p2) target bundleno = 336 (0x150), region = 28 }
   0xb   : > { %v288_v0 = vmov 0   ;;  %s337_s10 = smov (!%p144_p3, %s256_s10), 1  ;;  %vm158_vm0 = vcmask 261120   ;;  %v174_v7 = vlaneseq  ;;  %vm189_vm2 = vcmask 7168  }
   0xc   : > { %275 = vset.pattern.permute.xlu0 %v288_v0  ;;  %s312_s11 = sshll.u32 %s337_s10, 3 }
   0xd   : > { %s147_s14 = scalar_lea.vmem %s333_s0, %s312_s11  ;;  %s151_s17 = scalar_lea.vmem %s334_s1, %s312_s11  ;;  %v175_v8 = vand.u32 127, %v174_v7 }
   0xe   : > { %v156_v1 = vld [vmem:[%s147_s14] sm:$0xff]  ;;  %s155_s20 = scalar_lea.vmem %s335_s2, %s312_s11 }
   0xf   : > { %v159_v2 = vsel %vm158_vm0, %v156_v1, -inf  ;;  %v157_v3 = vld [vmem:[%s151_s17] sm:$0xff]  ;;  %v171_v14 = vsel %vm158_vm0, %v156_v1, 0.0 }
  0x10   : > { %160 = vmax.xlane.f32.xlu0 %v159_v2 }
  0x26   : > { %177 = vperm.xlu0 %275, %v157_v3  }
  0x99   : > { %v161_v4 = vpop.xlane.xlu0 %160 }
  0x9a   : > { %v162_v5 = vsub.f32 %v156_v1, %v161_v4 }
  0x9c   : > { %v163_v6 = vmul.f32 1.442695, %v162_v5 }
  0x9e   : > { %276 = vpow2.f32 %v163_v6 }
  0xa1   : > { %v178_v9 = vpop.permute.xlu0 %177 }
  0xa2   : > { %vm179_vm1 = vcmp.eq.s32.totalorder %v175_v8, %v178_v9 }
  0xa3   : > { %v180_v11 = vsel %vm179_vm1, %v156_v1, 0.0 }
  0xa4   : > { %v181_v13 = vsel %vm158_vm0, %v180_v11, 0.0 }
  0xab   : > { %v277_v10 = vpop.eup %276 }
  0xac   : > { %v165_v12 = vsel %vm158_vm0, %v277_v10, 0.0 }
  0xad   : > { %166 = vadd.xlane.f32.xlu1 %v165_v12 }
  0xb1   : > { %182 = vadd.xlane.f32.xlu1 %v181_v13 }
  0xb5   : > { %172 = vadd.xlane.f32.xlu1 %v171_v14 }
 0x136   : > { %v167_v15 = vpop.xlane.xlu1 %166 }
 0x137   : > { %278 = vlog2.f32 %v167_v15 }
 0x13a   : > { %v183_v16 = vpop.xlane.xlu1 %182 }
 0x13b   : > { %v185_v22 = vmul.f32 0.9, %v183_v16 }
 0x13e   : > { %v173_v19 = vpop.xlane.xlu1 %172 }
 0x13f   : > { %v187_v23 = vmul.f32 0.003125, %v173_v19 }
 0x144   : > { %v279_v17 = vpop.eup %278 }
 0x145   : > { %v169_v18 = vmul.f32 0.6931472, %v279_v17 }
 0x147   : > { %v170_v20 = vadd.f32 %v169_v18, %v161_v4 }
 0x149   : > { %v184_v21 = vadd.f32 -0.6508294, %v170_v20 }
 0x14b   : > { %v186_v24 = vsub.f32 %v184_v21, %v185_v22 }
 0x14d   : > { %v188_v25 = vsub.f32 %v186_v24, %v187_v23 }
 0x14f   : > { %190 = vst.msk [vmem:[%s155_s20] sm:$0xff] %vm189_vm2, %v188_v25 }
 0x150 PF: > { %s12_s9 = sadd.s32 1, %s286_s9  }
 0x151   : > { %p9_p4 = scmp.ge.s32.totalorder %s12_s9, 4  }
 0x153   :  { %11 = sbr.rel (!%p9_p4) target bundleno = 1 (0x1), region = 61 }

</bundles_post_ra>
